<compile_context>
chip_gen: v7x
topology: tpu7x:2x2x1
jax: 0.10.0
libtpu: 0.0.40
codegen_flags: <defaults>
</compile_context>

<pallas_src>
import functools

import jax
import jax.numpy as jnp
from jax.experimental import pallas as pl
from jax.experimental.pallas import tpu as pltpu

_LANE = 128


def _ce_kernel(tgt_ref, pred_ref, out_ref, *, alpha):
    """One grid step over a (1, C, TR, 128) logits tile and (1, TR, 128) label tile.

    tgt_ref  : VMEM (1, TR, 128) i32     integer class labels (-1 on padding -> 0 contribution)
    pred_ref : VMEM (1, C, TR, 128)      logits (any float dtype; cast to f32 in-kernel)
    out_ref  : VMEM (1, 1, 128) f32      per-batch lane-wise partial sums (resident over the
                                         row-tile grid axis)
    """
    j = pl.program_id(1)

    @pl.when(j == 0)
    def _():
        out_ref[...] = jnp.zeros_like(out_ref)

    p = pred_ref[0].astype(jnp.float32)          # (C, TR, 128)
    t = tgt_ref[0]                               # (TR, 128) int32
    num_classes = p.shape[0]

    # Numerically stable log-sum-exp over the (tiny, leading) class axis -> pure VPU/EUP work.
    m = jnp.max(p, axis=0)                                           # (TR, 128)
    lse = jnp.log(jnp.sum(jnp.exp(p - m[None, :, :]), axis=0))       # (TR, 128)

    # Gather the logit and the per-class weight at the target class via a static where-chain.
    p_sel = jnp.zeros_like(m)
    a_sel = jnp.zeros_like(m)
    for c in range(num_classes):                 # C is tiny & static -> unrolled
        is_c = t == c
        p_sel = jnp.where(is_c, p[c], p_sel)
        a_sel = jnp.where(is_c, jnp.float32(alpha[c]), a_sel)

    # -log_softmax(p)[t] = lse + m - p[t]; exclude padded voxels (t == -1) explicitly so
    # garbage/padded logits can never contribute (no 0 * inf).
    per_vox = jnp.where(t >= 0, a_sel * (lse + m - p_sel), jnp.float32(0.0))   # (TR, 128)

    # Lane-wise partial sums: 128 parallel accumulators per batch element.
    out_ref[...] += jnp.sum(per_vox, axis=0, keepdims=True)[None]    # (1, 1, 128)


def cross_entry_loss(target, pred, alpha=(0.1, 1.0), target_block_bytes=2 * 1024 * 1024):
    """target: (N, D, H, W) int labels; pred: (N, C, D, H, W) float logits."""
    N, C, D, H, W = pred.shape
    assert target.shape == (N, D, H, W)
    assert len(alpha) >= C

    DHW = D * H * W
    M = N * DHW

    # Choose tile_rows: sublane-aligned (multiple of 8) and sized so one logits block is
    # ~target_block_bytes (double-buffered pred+target stays well under every chip's VMEM).
    itemsize = jnp.dtype(pred.dtype).itemsize
    rows = pl.cdiv(DHW, _LANE)
    max_tile_rows = max(8, (target_block_bytes // (C * _LANE * itemsize)) // 8 * 8)
    if rows <= max_tile_rows:
        tile_rows = rows                 # single row-tile; block equals full extent
        rows_pad = rows
    else:
        tile_rows = max_tile_rows        # multiple of 8 -> sublane dense
        rows_pad = pl.cdiv(rows, tile_rows) * tile_rows
    dhw_pad = rows_pad * _LANE

    # Free, contiguous reshapes — no transpose, no dtype copy of the logits.
    pred3 = pred.reshape(N, C, DHW)
    tgt3 = target.reshape(N, DHW).astype(jnp.int32)
    if dhw_pad != DHW:
        # TODO(synk): ragged tail -> one extra HBM pad copy; only taken when D*H*W doesn't
        # line up with the 128-lane tiling.
        pred3 = jnp.pad(pred3, ((0, 0), (0, 0), (0, dhw_pad - DHW)))
        tgt3 = jnp.pad(tgt3, ((0, 0), (0, dhw_pad - DHW)), constant_values=-1)
    pred4 = pred3.reshape(N, C, rows_pad, _LANE)
    tgt4 = tgt3.reshape(N, rows_pad, _LANE)

    kernel = functools.partial(_ce_kernel, alpha=tuple(float(a) for a in alpha[:C]))

    partials = pl.pallas_call(
        kernel,
        out_shape=jax.ShapeDtypeStruct((N, 1, _LANE), jnp.float32),
        grid=(N, rows_pad // tile_rows),
        in_specs=[
            pl.BlockSpec((1, tile_rows, _LANE), lambda n, j: (n, j, 0)),       # labels
            pl.BlockSpec((1, C, tile_rows, _LANE), lambda n, j: (n, 0, j, 0)),  # logits
        ],
        out_specs=pl.BlockSpec((1, 1, _LANE), lambda n, j: (n, 0, 0)),
        compiler_params=pltpu.CompilerParams(
            dimension_semantics=("parallel", "arbitrary"),   # batch parallel, row-tiles accumulate
            vmem_limit_bytes=32 * 1024 * 1024,
        ),
    )(tgt4, pred4)

    # Each class term in the reference is a mean over the M = N*D*H*W voxels.
    return jnp.sum(partials) / jnp.float32(M)


def _ce_ref(target, pred, alpha=(0.1, 1.0)):
    """Pure-JAX reference mirroring the PyTorch module."""
    lp = jax.nn.log_softmax(pred.astype(jnp.float32), axis=1)
    loss = jnp.float32(0.0)
    for i in range(pred.shape[1]):
        y = (target == i).astype(jnp.float32)
        loss = loss + jnp.mean(-y * lp[:, i]) * alpha[i]
    return loss


if __name__ == "__main__":
    key = jax.random.PRNGKey(0)
    k_t, k_p = jax.random.split(key)

    N, C, D, H, W = 2, 2, 4, 8, 16          # alpha=[0.1, 1] implies 2 classes
    target = jax.random.randint(k_t, (N, D, H, W), 0, C, dtype=jnp.int32)
    pred = jax.random.normal(k_p, (N, C, D, H, W), dtype=jnp.float32)

    loss = cross_entry_loss(target, pred)
    loss = jax.block_until_ready(loss)

    ref = _ce_ref(target, pred)
    assert jnp.allclose(loss, ref, atol=1e-5, rtol=1e-5), (loss, ref)

    print("KERNEL_OK")
</pallas_src>

<mosaic_0001>
module attributes {stable_mosaic.version = 11 : i64} {
  func.func @_ce_kernel(%arg0: i32, %arg1: i32, %arg2: memref<1x4x128xi32, #tpu.memory_space<vmem>>, %arg3: memref<1x2x4x128xf32, #tpu.memory_space<vmem>>, %arg4: memref<1x1x128xf32, #tpu.memory_space<vmem>>) attributes {dimension_semantics = [#tpu.dimension_semantics<parallel>, #tpu.dimension_semantics<arbitrary>], iteration_bounds = array<i64: 2, 1>, scalar_prefetch = 0 : i64, scratch_operands = 0 : i64, tpu.core_type = #tpu.core_type<tc>, window_params = [{transform_indices = @transform_0, window_bounds = array<i64: 1, 4, 128>}, {transform_indices = @transform_1, window_bounds = array<i64: 1, 2, 4, 128>}, {transform_indices = @transform_2, window_bounds = array<i64: 1, 1, 128>}]} {
    %c0_i32 = arith.constant 0 : i32
    %0 = arith.cmpi eq, %arg1, %c0_i32 : i32
    %1 = arith.extui %0 : i1 to i32
    %c0_i32_0 = arith.constant 0 : i32
    %2 = arith.cmpi ne, %1, %c0_i32_0 : i32
    scf.if %2 {
      %cst_22 = arith.constant 0.000000e+00 : f32
      %43 = vector.broadcast %cst_22 : f32 to vector<1x1x128xf32>
      %c0_23 = arith.constant 0 : index
      %c0_24 = arith.constant 0 : index
      %c0_25 = arith.constant 0 : index
      %44 = vector.load %arg4[%c0_23, %c0_24, %c0_25] : memref<1x1x128xf32, #tpu.memory_space<vmem>>, vector<1x1x128xf32>
      tpu.vector_store %arg4[%c0_23, %c0_24, %c0_25], %43 {strides = array<i32>} : memref<1x1x128xf32, #tpu.memory_space<vmem>>, vector<1x1x128xf32>,
    } else {
    }
    %c0 = arith.constant 0 : index
    %c0_1 = arith.constant 0 : index
    %c0_2 = arith.constant 0 : index
    %c0_3 = arith.constant 0 : index
    %3 = vector.load %arg3[%c0, %c0_1, %c0_2, %c0_3] : memref<1x2x4x128xf32, #tpu.memory_space<vmem>>, vector<1x2x4x128xf32>
    %4 = vector.shape_cast %3 : vector<1x2x4x128xf32> to vector<2x4x128xf32>
    %c0_4 = arith.constant 0 : index
    %c0_5 = arith.constant 0 : index
    %c0_6 = arith.constant 0 : index
    %5 = vector.load %arg2[%c0_4, %c0_5, %c0_6] : memref<1x4x128xi32, #tpu.memory_space<vmem>>, vector<1x4x128xi32>
    %6 = vector.shape_cast %5 : vector<1x4x128xi32> to vector<4x128xi32>
    %cst = arith.constant dense<0xFF800000> : vector<4x128xf32>
    %7 = vector.multi_reduction <maximumf>, %4, %cst [0] : vector<2x4x128xf32> to vector<4x128xf32>
    %8 = vector.shape_cast %7 : vector<4x128xf32> to vector<1x4x128xf32>
    %9 = vector.broadcast %8 : vector<1x4x128xf32> to vector<2x4x128xf32>
    %10 = arith.subf %4, %9 : vector<2x4x128xf32>
    %11 = math.exp %10 : vector<2x4x128xf32>
    %cst_7 = arith.constant dense<0.000000e+00> : vector<4x128xf32>
    %12 = vector.multi_reduction <add>, %11, %cst_7 [0] : vector<2x4x128xf32> to vector<4x128xf32>
    %13 = math.log %12 : vector<4x128xf32>
    %cst_8 = arith.constant 0.000000e+00 : f32
    %14 = vector.broadcast %cst_8 : f32 to vector<4x128xf32>
    %cst_9 = arith.constant 0.000000e+00 : f32
    %15 = vector.broadcast %cst_9 : f32 to vector<4x128xf32>
    %c0_i32_10 = arith.constant 0 : i32
    %16 = vector.broadcast %c0_i32_10 : i32 to vector<4x128xi32>
    %17 = arith.cmpi eq, %6, %16 : vector<4x128xi32>
    %18 = vector.extract_strided_slice %4 {offsets = [0, 0, 0], sizes = [1, 4, 128], strides = [1, 1, 1]} : vector<2x4x128xf32> to vector<1x4x128xf32>
    %19 = vector.shape_cast %18 : vector<1x4x128xf32> to vector<4x128xf32>
    %20 = arith.select %17, %19, %14 : vector<4x128xi1>, vector<4x128xf32>
    %cst_11 = arith.constant 1.000000e-01 : f32
    %21 = vector.broadcast %cst_11 : f32 to vector<4x128xf32>
    %22 = arith.select %17, %21, %15 : vector<4x128xi1>, vector<4x128xf32>
    %c1_i32 = arith.constant 1 : i32
    %23 = vector.broadcast %c1_i32 : i32 to vector<4x128xi32>
    %24 = arith.cmpi eq, %6, %23 : vector<4x128xi32>
    %25 = vector.extract_strided_slice %4 {offsets = [1, 0, 0], sizes = [1, 4, 128], strides = [1, 1, 1]} : vector<2x4x128xf32> to vector<1x4x128xf32>
    %26 = vector.shape_cast %25 : vector<1x4x128xf32> to vector<4x128xf32>
    %27 = arith.select %24, %26, %20 : vector<4x128xi1>, vector<4x128xf32>
    %cst_12 = arith.constant 1.000000e+00 : f32
    %28 = vector.broadcast %cst_12 : f32 to vector<4x128xf32>
    %29 = arith.select %24, %28, %22 : vector<4x128xi1>, vector<4x128xf32>
    %c0_i32_13 = arith.constant 0 : i32
    %30 = vector.broadcast %c0_i32_13 : i32 to vector<4x128xi32>
    %31 = arith.cmpi sge, %6, %30 : vector<4x128xi32>
    %32 = arith.addf %13, %7 : vector<4x128xf32>
    %33 = arith.subf %32, %27 : vector<4x128xf32>
    %34 = arith.mulf %29, %33 : vector<4x128xf32>
    %cst_14 = arith.constant 0.000000e+00 : f32
    %35 = vector.broadcast %cst_14 : f32 to vector<4x128xf32>
    %36 = arith.select %31, %34, %35 : vector<4x128xi1>, vector<4x128xf32>
    %c0_15 = arith.constant 0 : index
    %c0_16 = arith.constant 0 : index
    %c0_17 = arith.constant 0 : index
    %37 = vector.load %arg4[%c0_15, %c0_16, %c0_17] : memref<1x1x128xf32, #tpu.memory_space<vmem>>, vector<1x1x128xf32>
    %cst_18 = arith.constant dense<0.000000e+00> : vector<128xf32>
    %38 = vector.multi_reduction <add>, %36, %cst_18 [0] : vector<4x128xf32> to vector<128xf32>
    %39 = vector.shape_cast %38 : vector<128xf32> to vector<1x128xf32>
    %40 = vector.shape_cast %39 : vector<1x128xf32> to vector<1x1x128xf32>
    %41 = arith.addf %37, %40 : vector<1x1x128xf32>
    %c0_19 = arith.constant 0 : index
    %c0_20 = arith.constant 0 : index
    %c0_21 = arith.constant 0 : index
    %42 = vector.load %arg4[%c0_19, %c0_20, %c0_21] : memref<1x1x128xf32, #tpu.memory_space<vmem>>, vector<1x1x128xf32>
    tpu.vector_store %arg4[%c0_19, %c0_20, %c0_21], %41 {strides = array<i32>} : memref<1x1x128xf32, #tpu.memory_space<vmem>>, vector<1x1x128xf32>,
    return
  }
  func.func @transform_0(%arg0: i32, %arg1: i32) -> (i32, i32, i32) {
    %c0_i32 = arith.constant 0 : i32
    %c0_i32_0 = arith.constant 0 : i32
    return %arg0, %arg1, %c0_i32 : i32, i32, i32
  }
  func.func @transform_1(%arg0: i32, %arg1: i32) -> (i32, i32, i32, i32) {
    %c0_i32 = arith.constant 0 : i32
    %c0_i32_0 = arith.constant 0 : i32
    %c0_i32_1 = arith.constant 0 : i32
    return %arg0, %c0_i32, %arg1, %c0_i32_0 : i32, i32, i32, i32
  }
  func.func @transform_2(%arg0: i32, %arg1: i32) -> (i32, i32, i32) {
    %c0_i32 = arith.constant 0 : i32
    %c0_i32_0 = arith.constant 0 : i32
    %c0_i32_1 = arith.constant 0 : i32
    return %arg0, %c0_i32, %c0_i32_0 : i32, i32, i32
  }
}

</mosaic_0001>

<bundles_post_ra>
// kernel: tpu_custom_call.1
= control target key start
LH: loop header
LB: loop body
LE: loop exit
PB: predicated region body
PF: predicated region fallthrough
CT: control target
= control target key end

     0   :  { %7 = vsyncpa [#allocation3], 0  ;;  %s869_s0 = inlined_call_operand.hbm [shape: s32[2,4,128], index: 0, kind: input, shape index: {}]   ;;  %s870_s1 = inlined_call_operand.hbm [shape: f32[2,2,4,128], index: 1, kind: input, shape index: {}]   ;;  %s871_s2 = inlined_call_operand.hbm [shape: f32[2,1,128], index: 2, kind: output, shape index: {}]  }
   0x1   :  { %9 = vsyncpa [#allocation3 + $0x1], 0 }
   0x2   :  { %10 = vsyncpa [#allocation6], 0 }
   0x3   :  { %12 = vsyncpa [#allocation6 + $0x1], 0 }
   0x4   :  { %13 = vsyncpa [#allocation4], 0 }
   0x5   :  { %15 = vsyncpa [#allocation4 + $0x1], 0  ;;  %s634_s9 = smov 0   ;;  %s636_s10 = smov 0  }
   0x6   :  { %s638_s11 = smov 0   ;;  %s640_s12 = smov 0  }
   0x7   :  { %s642_s13 = smov 0   ;;  %s644_s14 = smov 0  }
   0x8 LB: > { %s373_s15 = sadd.s32 4294967295, %s611_s14   ;;  %s374_s16 = sadd.s32 4294967294, %s611_s14   ;;  %s611_s14 = sphi %s644_s14, %s21_s14   ;;  %s607_s13 = sphi %s642_s13, %s890_s13   ;;  %s603_s12 = sphi %s640_s12, %s889_s12   ;;  %s599_s11 = sphi %s638_s11, %s888_s11   ;;  %s595_s10 = sphi %s636_s10, %s887_s10   ;;  %s591_s9 = sphi %s634_s9, %s886_s9  }
   0x9   : > { %s33_s17 = sadd.s32 1, %s607_s13  ;;  %s42_s18 = sadd.s32 1, %s599_s11 }
   0xa   : > { %p35_p0 = scmp.ge.s32.totalorder %s33_s17, 2  ;;  %p49_p1 = scmp.ne.s32.totalorder %s599_s11, %s595_s10 }
   0xb   : > { %p50_p2 = scmp.eq.s32.totalorder %s611_s14, 0  ;;  %p55_p3 = scmp.ne.s32.totalorder %s595_s10, %s591_s9 }
   0xc   : > { %s892_s17 = smov (%p35_p0, %s33_s17), 0  ;;  %p56_p5 = scmp.eq.s32.totalorder %s373_s15, 0 }
   0xd   : > { %p675_p4 = por %p50_p2, %p49_p1  ;;  %s37_s20 = ssub.s32 %s607_s13, %s892_s17 }
   0xe   : > { %p107_p6 = scmp.eq.s32.totalorder %s373_s15, 1  ;;  %p40_p7 = scmp.eq.s32.totalorder %s37_s20, 0 }
   0xf   : > { %p681_p8 = por %p56_p5, %p55_p3  ;;  %p113_p10 = scmp.eq.s32.totalorder %s374_s16, 1 }
  0x10   : > { %p685_p9 = por %p107_p6, %p49_p1  ;;  %p406_p13 = scmp.lt.s32.totalorder %s611_s14, 2 }
  0x11   : > { %s875_s21 = scalar_select %p681_p8, 1, 0 }
  0x12   : > { %s876_s22 = scalar_select %p685_p9, 1, 0 }
  0x13   : > { %s690_s23 = scalar_select %p40_p7, %s599_s11, %s42_s18  }
  0x14   : > { %p692_p11 = por %p113_p10, %p55_p3  ;;  %s699_s25 = sand.u32 1, %s599_s11  }
  0x15   : > { %s377_s26 = sshll.u32 %s699_s25, 2  ;;  %s378_s27 = sshll.u32 %s607_s13, 6 }
  0x16   : > { %s877_s24 = scalar_select %p692_p11, 1, 0 }
  0x17   : > { %s706_s30 = scalar_lea.hbm %s869_s0, %s378_s27  ;;  %s137_s3 = scalar_lea.vmem [#allocation2], %s377_s26 }
  0x18   : > { %s145_s4 = sshll.u32 %s137_s3, 4  ;;  %p712_p0 = pnand %p406_p13, %p675_p4  ;;  %s708_s4 = int_to_ptr.vmem [resolvable:$true] %s145_s4 }
  0x19   : > { %s134_s6 = scalar_lea.sflag [#allocation3], %s699_s25  ;;  %s465_s7 = scalar_lea.hbm %s706_s30, 64 }
  0x1a   : > { %p466_p3 = scmp.ne.s32.totalorder %s706_s30, %s465_s7  ;;  %p467_p5 = pneg %p712_p0 }
  0x1b   : > { %s470_s16 = scalar_lea.hbm %s869_s0, 128  ;;  %p471_p4 = scmp.lt.u32.totalorder %s706_s30, %s869_s0 }
  0x1c   : > { %p468_p6 = pnand %p467_p5, %p466_p3  ;;  %p472_p10 = scmp.lt.u32.totalorder %s470_s16, %s465_s7 }
  0x1d   : > { %p474_p12 = scmp.lt.u32.totalorder %s465_s7, %s706_s30 }
  0x1e   : > { %p469_p7 = pneg %p468_p6  ;;  %p473_p13 = por %p472_p10, %p471_p4 }
  0x20   : > { %p475_p1 = por %p474_p12, %p473_p13 }
  0x22   : > { %p476_p2 = pnand %p475_p1, %p469_p7 }
  0x24   : > { %479 = shalt.err (!%p476_p2)
}
  0x25   : > { %s480_s20 = scalar_lea.vmem %s708_s4, 64  ;;  %s613_s26 = smov [#allocation2]  }
  0x26   : > { %p481_p3 = scmp.ne.s32.totalorder %s708_s4, %s480_s20  ;;  %s485_s27 = sshll.u32 %s613_s26, 4  ;;  %s486_s27 = int_to_ptr.vmem [resolvable:$false] %s485_s27 }
  0x27   : > { %s487_s28 = scalar_lea.vmem %s486_s27, 128  ;;  %p488_p9 = scmp.lt.s32.totalorder %s708_s4, %s486_s27 }
  0x28   : > { %p483_p6 = pnand %p481_p3, %p467_p5  ;;  %p489_p4 = scmp.lt.s32.totalorder %s487_s28, %s480_s20 }
  0x2a   : > { %p484_p11 = pneg %p483_p6  ;;  %p490_p10 = por %p489_p4, %p488_p9 }
  0x2c   : > { %p491_p12 = pnand %p490_p10, %p484_p11 }
  0x2e   : > { %494 = shalt.err (!%p491_p12)
}
  0x2f   : > { %398 = dma.hbm_to_vmem [thread:$0]  (!%p712_p0), %s706_s30, 64, %s708_s4, %s134_s6  }
  0x30   : > { %p879_p1 = scmp.lt.s32.totalorder %s611_s14, 3  ;;  %p880_p2 = scmp.ge.s32.totalorder %s611_s14, 1 }
  0x31   : > { %s379_s3 = sshll.u32 %s699_s25, 3  ;;  %s388_s7 = sshll.u32 %s607_s13, 7 }
  0x32   : > { %p748_p7 = pnand %p880_p2, %p879_p1  ;;  %s757_s16 = scalar_lea.hbm %s870_s1, %s388_s7 }
  0x33   : > { %s156_s18 = scalar_lea.vmem [#allocation5], %s379_s3  ;;  %s153_s30 = scalar_lea.sflag [#allocation6], %s699_s25 }
  0x34   : > { %s164_s19 = sshll.u32 %s156_s18, 4  ;;  %s495_s4 = scalar_lea.hbm %s757_s16, 128  ;;  %s759_s19 = int_to_ptr.vmem [resolvable:$true] %s164_s19 }
  0x35   : > { %p496_p9 = scmp.ne.s32.totalorder %s757_s16, %s495_s4  ;;  %s500_s26 = scalar_lea.hbm %s870_s1, 256 }
  0x36   : > { %p501_p3 = scmp.lt.u32.totalorder %s757_s16, %s870_s1  ;;  %p502_p6 = scmp.lt.u32.totalorder %s500_s26, %s495_s4 }
  0x37   : > { %p498_p11 = pnand %p496_p9, %p467_p5  ;;  %p504_p10 = scmp.lt.u32.totalorder %s495_s4, %s757_s16 }
  0x38   : > { %p503_p4 = por %p502_p6, %p501_p3 }
  0x39   : > { %p499_p13 = pneg %p498_p11 }
  0x3a   : > { %p505_p12 = por %p504_p10, %p503_p4 }
  0x3c   : > { %p506_p1 = pnand %p505_p12, %p499_p13 }
  0x3e   : > { %509 = shalt.err (!%p506_p1)
}
  0x3f   : > { %s510_s3 = scalar_lea.vmem %s759_s19, 128  ;;  %s614_s7 = smov [#allocation5]  }
  0x40   : > { %p511_p2 = scmp.ne.s32.totalorder %s759_s19, %s510_s3  ;;  %s515_s8 = sshll.u32 %s614_s7, 4  ;;  %s516_s8 = int_to_ptr.vmem [resolvable:$false] %s515_s8 }
  0x41   : > { %s517_s15 = scalar_lea.vmem %s516_s8, 256  ;;  %p518_p8 = scmp.lt.s32.totalorder %s759_s19, %s516_s8 }
  0x42   : > { %p513_p9 = pnand %p511_p2, %p467_p5  ;;  %p519_p3 = scmp.lt.s32.totalorder %s517_s15, %s510_s3 }
  0x44   : > { %p514_p11 = pneg %p513_p9  ;;  %p520_p6 = por %p519_p3, %p518_p8 }
  0x46   : > { %p521_p4 = pnand %p520_p6, %p514_p11 }
  0x48   : > { %524 = shalt.err (!%p521_p4)
}
  0x49   : > { %s615_s18 = smov 64   ;;  %s616_s4 = smov 4  }
  0x4a   : > { %401 = dma.hbm_to_vmem [thread:$0]  (!%p712_p0), %s757_s16, 128, %s759_s19, %s153_s30, %s615_s18, %s615_s18, %s616_s4  }
  0x4b   : > { %176 = sbr.rel (%p748_p7) target bundleno = 159 (0x9f), region = 28  ;;  %s790_s6 = sand.u32 (!%p748_p7), 1, %s595_s10  }
  0x4c   : > { %s383_s20 = sshll.u32 (!%p748_p7), %s790_s6, 2  ;;  %s179_s26 = scalar_lea.sflag (!%p748_p7), [#allocation3], %s790_s6 }
  0x4d   : > { %s182_s27 = scalar_lea.vmem (!%p748_p7), [#allocation2], %s383_s20  ;;  %p882_p8 = scmp.ne.s32.totalorder (!%p748_p7), %s875_s21, 0 }
  0x52   : > { %578 = dma.done.wait (%p882_p8), %s179_s26, 64  }
  0x53   : > { %580 = vsyncadd (%p882_p8), %s179_s26, 4294967232  ;;  %s384_s25 = sshll.u32 %s790_s6, 3  ;;  %s188_s5 = scalar_lea.sflag [#allocation6], %s790_s6 }
  0x54   : > { %s191_s29 = scalar_lea.vmem [#allocation5], %s384_s25 }
  0x55   : > { %582 = dma.done.wait (%p882_p8), %s188_s5, 128  }
  0x56   : > { %584 = vsyncadd (%p882_p8), %s188_s5, 4294967168  ;;  %s805_s16 = scalar_lea.vmem [#allocation7], %s790_s6  ;;  %v617_v0 = vmov 0.0   ;;  %vm224_vm0 = vcmask 1043456   ;;  %v221_v1 = vld [vmem:[%s191_s29] sm:$0xf] }
  0x57   : > { %220 = vst [vmem:[%s805_s16] sm:$0x1] %v617_v0  ;;  %v222_v2 = vld [vmem:[%s191_s29 + $0x4] sm:$0xf]  ;;  %v225_v3 = vsel %vm224_vm0, %v221_v1, -inf  ;;  %v223_v15 = vld [vmem:[%s182_s27] sm:$0xf] }
  0x58   : > { %v226_v4 = vsel %vm224_vm0, %v222_v2, -inf  ;;  %vm239_vm1 = vcmp.eq.s32.totalorder %v223_v15, 0  ;;  %vm242_vm2 = vcmp.eq.s32.totalorder %v223_v15, 1  ;;  %vm245_vm3 = vcmp.ge.s32.totalorder %v223_v15, 0  ;;  %s385_s21 = sshll.u32 %s603_s12, 4  ;;  %s273_s19 = sshll.u32 %s805_s16, 4  ;;  %s821_s19 = int_to_ptr.vmem [resolvable:$true] %s273_s19 }
  0x59   : > { %v227_v5 = vmax.f32 %v225_v3, %v226_v4  ;;  %v240_v16 = vsel %vm239_vm1, %v221_v1, 0.0  ;;  %v241_v19 = vsel %vm239_vm1, 0.1, %v617_v0  ;;  %s819_s3 = scalar_lea.hbm %s871_s2, %s385_s21  ;;  %s261_s7 = scalar_lea.sflag [#allocation4], %s790_s6 }
  0x5a   : > { %v243_v20 = vsel %vm242_vm2, %v222_v2, %v240_v16  ;;  %v244_v22 = vsel %vm242_vm2, 1.0, %v241_v19  ;;  %s525_s8 = scalar_lea.vmem %s821_s19, 16  ;;  %p883_p5 = scmp.ne.s32.totalorder %s876_s22, 0 }
  0x5b   : > { %v228_v6 = vsub.f32 %v221_v1, %v227_v5  ;;  %v229_v7 = vsub.f32 %v222_v2, %v227_v5  ;;  %p526_p0 = scmp.ne.s32.totalorder %s821_s19, %s525_s8  ;;  %s618_s12 = smov [#allocation7]  }
  0x5c   : > { %s529_s15 = sshll.u32 %s618_s12, 4  ;;  %s530_s15 = int_to_ptr.vmem [resolvable:$false] %s529_s15 }
  0x5d   : > { %v230_v8 = vmul.f32 1.442695, %v228_v6  ;;  %v232_v9 = vmul.f32 1.442695, %v229_v7  ;;  %p527_p7 = pnand %p526_p0, %p883_p5  ;;  %s531_s18 = scalar_lea.vmem %s530_s15, 32 }
  0x5e   : > { %v250_v32 = vld [vmem:[%s805_s16] sm:$0x1]  ;;  %p532_p10 = scmp.lt.s32.totalorder %s821_s19, %s530_s15  ;;  %p533_p12 = scmp.lt.s32.totalorder %s531_s18, %s525_s8 }
  0x5f   : > { %459 = vpow2.f32 %v230_v8  ;;  %p528_p13 = pneg %p527_p7 }
  0x60   : > { %461 = vpow2.f32 %v232_v9  ;;  %p534_p1 = por %p533_p12, %p532_p10 }
  0x62   : > { %p535_p2 = pnand %p534_p1, %p528_p13 }
  0x69   : > { %v460_v10 = vpop.eup %459 }
  0x6a   : > { %v462_v11 = vpop.eup %461  ;;  %v234_v12 = vsel %vm224_vm0, %v460_v10, 0.0 }
  0x6b   : > { %v235_v13 = vsel %vm224_vm0, %v462_v11, 0.0 }
  0x6c   : > { %v236_v14 = vadd.f32 %v235_v13, %v234_v12 }
  0x6e   : > { %463 = vlog2.f32 %v236_v14 }
  0x78   : > { %v464_v17 = vpop.eup %463 }
  0x79   : > { %v238_v18 = vmul.f32 0.6931472, %v464_v17 }
  0x7b   : > { %v246_v21 = vadd.f32 %v238_v18, %v227_v5 }
  0x7d   : > { %v247_v23 = vsub.f32 %v246_v21, %v243_v20 }
  0x7f   : > { %v248_v24 = vmul.f32 %v247_v23, %v244_v22 }
  0x81   : > { %v249_v25 = vsel %vm245_vm3, %v248_v24, 0.0 }
  0x82   : > { %v251_v26 = vsel %vm224_vm0, %v249_v25, 0.0 }
  0x83   : > { %v252_v27 = vrot.slane %v251_v26, 4 }
  0x85   : > { %v253_v28 = vadd.f32 %v252_v27, %v251_v26 }
  0x87   : > { %v254_v29 = vrot.slane %v253_v28, 2 }
  0x89   : > { %v255_v30 = vadd.f32 %v254_v29, %v253_v28 }
  0x8b   : > { %v256_v31 = vrot.slane %v255_v30, 1 }
  0x8d   : > { %v257_v33 = vadd.f32 %v256_v31, %v255_v30 }
  0x8f   : > { %v258_v34 = vadd.f32 %v257_v33, %v250_v32 }
  0x91   : > { %259 = vst [vmem:[%s805_s16] sm:$0x1] %v258_v34 }
  0x92   : > { %538 = shalt.err (!%p535_p2)
}
  0x93   : > { %s539_s4 = scalar_lea.hbm %s819_s3, 16  ;;  %s543_s26 = scalar_lea.hbm %s871_s2, 32 }
  0x94   : > { %p540_p9 = scmp.ne.s32.totalorder %s819_s3, %s539_s4  ;;  %p544_p6 = scmp.lt.u32.totalorder %s819_s3, %s871_s2 }
  0x95   : > { %p545_p4 = scmp.lt.u32.totalorder %s543_s26, %s539_s4  ;;  %p547_p0 = scmp.lt.u32.totalorder %s539_s4, %s819_s3 }
  0x96   : > { %p541_p11 = pnand %p540_p9, %p883_p5 }
  0x97   : > { %p546_p8 = por %p545_p4, %p544_p6 }
  0x98   : > { %p542_p3 = pneg %p541_p11 }
  0x99   : > { %p548_p7 = por %p547_p0, %p546_p8 }
  0x9b   : > { %p549_p13 = pnand %p548_p7, %p542_p3 }
  0x9d   : > { %552 = shalt.err (!%p549_p13)
}
  0x9e   : > { %393 = dma.vmem_to_hbm [thread:$0]  (%p883_p5), %s821_s19, 16, %s819_s3, %s261_s7  }
  0x9f PF: > { %s285_s5 = sand.u32 1, %s591_s9   ;;  %p884_p10 = scmp.ne.s32.totalorder %s877_s24, 0 }
  0xa0   : > { %p885_p12 = scmp.ge.s32.totalorder %s611_s14, 2  ;;  %s286_s29 = scalar_lea.sflag [#allocation4], %s285_s5 }
  0xa2   : > { %p403_p1 = pnand %p885_p12, %p884_p10 }
  0xa4   : > { %586 = dma.done.wait (!%p403_p1), %s286_s29, 16  }
  0xa5   : > { %588 = vsyncadd (!%p403_p1), %s286_s29, 4294967280  ;;  %s21_s14 = sadd.s32 1, %s611_s14   ;;  %s886_s9 = smov %s595_s10 }
  0xa6   : > { %p18_p2 = scmp.ge.s32.totalorder %s21_s14, 4   ;;  %s887_s10 = smov %s599_s11 }
  0xa7   : > { %s888_s11 = smov %s690_s23  ;;  %s889_s12 = smov %s607_s13 }
  0xa8   : > { %s890_s13 = smov %s892_s17  ;;  %20 = sbr.rel (!%p18_p2) target bundleno = 8 (0x8), region = 90 }
  0xaf   :  { %290 = vsyncpa [#allocation3], 1 }
  0xb0   :  { %292 = vsyncpa [#allocation3 + $0x1], 1 }
  0xb1   :  { %293 = vsyncpa [#allocation6], 1 }
  0xb2   :  { %295 = vsyncpa [#allocation6 + $0x1], 1 }
  0xb3   :  { %296 = vsyncpa [#allocation4], 1 }
  0xb4   :  { %298 = vsyncpa [#allocation4 + $0x1], 1 }

</bundles_post_ra>
